<compile_context>
chip_gen: v7x
topology: tpu7x:2x2x1
jax: 0.10.0
libtpu: 0.0.40
codegen_flags: <defaults>
</compile_context>

<pallas_src>
from functools import partial
from math import sqrt

import jax
import jax.numpy as jnp
from jax.experimental import pallas as pl
from jax.experimental.pallas import tpu as pltpu


def _modconv_kernel(s_ref, w_ref, x_ref, o_ref, wm_ref, *, k, tile_h, w_out,
                    demodulate, eps, fold_kx):
    """One (batch, h-tile) grid step.

    s_ref : (1, D, 1)             fp32  per-batch style (D = C_in, or K*C_in when folded)
    w_ref : (T, D, C_out_pad)     fp32  shared base weight (T = K*K, or K when folded)
    x_ref : (1, Hp, Wx, Cx)       bf16  padded channels-last input (resident per batch)
    o_ref : (1, TILE_H*W, C_out_pad)    output rows of this tile (lane-dense C_out)
    wm_ref: (T, D, C_out_pad)     bf16  VMEM scratch: per-batch modulated weight
    """
    c_out_pad = o_ref.shape[-1]
    thw = tile_h * w_out

    # --- per batch: modulate + demodulate the shared weight ONCE (hoisted out of the
    #     per-tile loop; ti axis is "arbitrary" so ti == 0 runs first for each batch) ---
    @pl.when(pl.program_id(1) == 0)
    def _():
        wm = w_ref[...] * s_ref[...]                       # fp32 (T, D, C_out_pad)
        if demodulate:
            ssq = jnp.sum(wm * wm, axis=1, keepdims=True)  # reduce D (sublanes)
            ssq = jnp.sum(ssq, axis=0, keepdims=True)      # reduce taps -> (1,1,C)
            wm = wm * jax.lax.rsqrt(ssq + eps)             # rsqrt -> EUP slot
        wm_ref[...] = wm.astype(wm_ref.dtype)              # bf16 for the MXU

    # --- conv as shifted slab matmuls on the MXU, fp32 accumulation ---
    t = pl.program_id(1)
    row0 = pl.multiple_of(t * tile_h, tile_h)
    acc = jnp.zeros((thw, c_out_pad), jnp.float32)
    if fold_kx:
        # Horizontal taps pre-folded into channels: K full-width slabs, depth K*C_in.
        kc = x_ref.shape[-1]                               # K * C_in
        for ky in range(k):
            xs = x_ref[0, pl.ds(row0 + ky, tile_h), :, :]  # (TILE_H, W, K*C_in)
            xs = xs.reshape(thw, kc)                       # merge leading dims (cheap)
            acc = acc + jnp.dot(xs, wm_ref[ky],            # read wm slice just-in-time
                                preferred_element_type=jnp.float32)
    else:
        c_in = x_ref.shape[-1]
        for ky in range(k):
            for kx in range(k):
                xs = x_ref[0, pl.ds(row0 + ky, tile_h), pl.ds(kx, w_out), :]
                xs = xs.reshape(thw, c_in)
                acc = acc + jnp.dot(xs, wm_ref[ky * k + kx],
                                    preferred_element_type=jnp.float32)
    o_ref[0] = acc.astype(o_ref.dtype)


def _vmem_capacity_bytes():
    try:
        return int(pltpu.get_tpu_info().vmem_capacity_bytes)
    except Exception:
        return 64 * 1024 * 1024          # conservative (v7x per-TensorCore)


def _pick_tile_h(h, w, target_rows):
    """Largest divisor of h whose row tile (tile_h*w) is <= target_rows and 8-aligned."""
    for d in range(h, 0, -1):
        if h % d:
            continue
        thw = d * w
        if thw <= target_rows and (d == h or thw % 8 == 0):
            return d
    # Wide rows (w > target_rows): fall back to single-row tiles instead of silently
    # blowing up to a whole-image tile / accumulator.
    # TODO(synk): add a W-tile grid axis for very wide images (w * c_out_pad fp32 acc).
    return 1 if w % 8 == 0 else h


def conv2d_weight_modulate(x, s, weight, *, demodulate=True, eps=1e-8,
                           out_dtype=None, tile_rows=None):
    """StyleGAN2 modulated conv.

    x: [B, C_in, H, W] (NCHW), s: [B, C_in], weight: [C_out, C_in, K, K]
    (already equalized).  Returns [B, C_out, H, W] in `out_dtype` (default x.dtype;
    pass bf16 when the surrounding network runs bf16 to halve HBM write traffic).
    """
    b, c_in, h, w = x.shape
    c_out, _, k, _ = weight.shape
    assert k % 2 == 1, "odd kernel sizes only (matches StyleGAN2 usage)"
    pad = (k - 1) // 2
    hw = h * w
    hp = h + 2 * pad
    c_out_pad = ((c_out + 127) // 128) * 128          # lane-dense, unmasked stores
    # TODO(synk): for tiny C_out (toRGB, C_out=3) the padded-lane HBM write dominates;
    # pack rows into the lane dim / emit a masked narrow output for those layers.
    out_dtype = x.dtype if out_dtype is None else out_dtype

    vmem_cap = _vmem_capacity_bytes()
    if tile_rows is None:                             # bigger tiles on 128 MiB chips
        tile_rows = 1024 if vmem_cap >= 100 * 1024 * 1024 else 512
    tile_h = _pick_tile_h(h, w, tile_rows)
    n_th = h // tile_h

    # Shallow-channel layers: fold the K horizontal taps into the channel axis so the
    # MXU contraction depth becomes K*C_in (Kx deeper, Kx fewer dots, no width-sliced
    # relayouts in the kernel).  Costs Kx the (small) input bytes -> only for small C_in.
    fold_kx = c_in < 128

    # --- layout prep (cheap XLA passes; bf16 halves activation traffic) ---
    x_nhwc = jnp.transpose(x, (0, 2, 3, 1))
    x_pad = jnp.pad(x_nhwc, ((0, 0), (pad, pad), (pad, pad), (0, 0)))
    if fold_kx:
        x_in = jnp.concatenate([x_pad[:, :, kx:kx + w, :] for kx in range(k)], axis=-1)
    else:
        x_in = x_pad
    x_in = x_in.astype(jnp.bfloat16)
    xw, xc = x_in.shape[2], x_in.shape[3]

    # weight [O, I, K, K] -> (taps, D, C_out_pad), fp32 (accurate demod), O zero-padded.
    w_t = jnp.transpose(weight, (2, 3, 1, 0)).astype(jnp.float32)       # (K, K, I, O)
    w_t = jnp.pad(w_t, ((0, 0), (0, 0), (0, 0), (0, c_out_pad - c_out)))
    if fold_kx:
        w_in = w_t.reshape(k, k * c_in, c_out_pad)
        s_col = jnp.tile(s.astype(jnp.float32), (1, k))[:, :, None]     # (B, K*C_in, 1)
    else:
        w_in = w_t.reshape(k * k, c_in, c_out_pad)
        s_col = s.astype(jnp.float32)[:, :, None]                       # (B, C_in, 1)
    n_taps, d_in = w_in.shape[0], w_in.shape[1]

    kernel = partial(_modconv_kernel, k=k, tile_h=tile_h, w_out=w,
                     demodulate=demodulate, eps=eps, fold_kx=fold_kx)

    cost = pl.CostEstimate(
        flops=2 * b * hw * (c_in * k * k) * c_out_pad,
        transcendentals=b * c_out_pad,
        bytes_accessed=(x_in.size * 2 + w_in.size * 4 + s_col.size * 4
                        + b * hw * c_out_pad * jnp.dtype(out_dtype).itemsize),
    )

    out = pl.pallas_call(
        kernel,
        out_shape=jax.ShapeDtypeStruct((b, hw, c_out_pad), out_dtype),
        grid_spec=pltpu.PrefetchScalarGridSpec(
            num_scalar_prefetch=0,
            grid=(b, n_th),
            in_specs=[
                # TODO(synk): single-buffer the constant-index weight / per-batch x
                # (pipeline_mode=pl.Buffered(1) or manual DMA) to halve their VMEM, and
                # switch x to halo-tiled manual DMA for very high resolutions on v7x.
                pl.BlockSpec((1, d_in, 1), lambda bi, ti: (bi, 0, 0)),            # style
                pl.BlockSpec((n_taps, d_in, c_out_pad), lambda bi, ti: (0, 0, 0)),  # weight
                pl.BlockSpec((1, hp, xw, xc), lambda bi, ti: (bi, 0, 0, 0)),      # x / batch
            ],
            out_specs=pl.BlockSpec((1, tile_h * w, c_out_pad),
                                   lambda bi, ti: (bi, ti, 0)),
            scratch_shapes=[pltpu.VMEM((n_taps, d_in, c_out_pad), jnp.bfloat16)],
        ),
        compiler_params=pltpu.CompilerParams(
            # ti is "arbitrary" so the per-batch weight modulation (ti == 0) is
            # guaranteed to run before the other H-tiles of that batch element.
            dimension_semantics=("parallel", "arbitrary"),
            vmem_limit_bytes=min(3 * vmem_cap // 4, 96 * 1024 * 1024)),
        cost_estimate=cost,
    )(s_col, w_in, x_in)

    # [B, H*W, C_out_pad] -> [B, C_out, H, W] (module API is NCHW).
    # TODO(synk): expose an NHWC-output variant so channels-last consumers skip this
    # extra full read+write of the activation (and the NCHW->NHWC input pass).
    out = out[:, :, :c_out].reshape(b, h, w, c_out)
    return jnp.transpose(out, (0, 3, 1, 2))


def _reference(x, s, weight, demodulate=True, eps=1e-8):
    """Pure-JAX fp32 reference mirroring the PyTorch module (grouped conv)."""
    b, c_in, h, w = x.shape
    c_out, _, k, _ = weight.shape
    pad = (k - 1) // 2
    weights = weight[None] * s[:, None, :, None, None]            # [B, O, I, K, K]
    if demodulate:
        sigma_inv = jax.lax.rsqrt(
            jnp.sum(weights ** 2, axis=(2, 3, 4), keepdims=True) + eps)
        weights = weights * sigma_inv
    xg = x.reshape(1, b * c_in, h, w)
    wg = weights.reshape(b * c_out, c_in, k, k)
    out = jax.lax.conv_general_dilated(
        xg, wg, window_strides=(1, 1), padding=[(pad, pad), (pad, pad)],
        dimension_numbers=("NCHW", "OIHW", "NCHW"),
        feature_group_count=b)
    return out.reshape(b, c_out, h, w)


def _run_case(key, b, c_in, c_out, k, h, w, tile_rows=None, tol=4e-2):
    k_w, k_x, k_s = jax.random.split(key, 3)
    # EqualizedWeight: randn([out, in, k, k]) scaled by 1/sqrt(in*k*k)
    raw_w = jax.random.normal(k_w, (c_out, c_in, k, k), dtype=jnp.float32)
    weight = raw_w * (1.0 / sqrt(c_in * k * k))
    x = jax.random.normal(k_x, (b, c_in, h, w), dtype=jnp.float32)
    s = jax.random.normal(k_s, (b, c_in), dtype=jnp.float32)

    out = jax.block_until_ready(
        conv2d_weight_modulate(x, s, weight, demodulate=True, eps=1e-8,
                               tile_rows=tile_rows))
    ref = jax.block_until_ready(_reference(x, s, weight, demodulate=True, eps=1e-8))
    assert out.shape == (b, c_out, h, w)
    # bf16 activations / modulated weight, fp32 MXU accumulation vs fp32 reference.
    err = float(jnp.max(jnp.abs(out - ref)))
    assert bool(jnp.allclose(out, ref, rtol=tol, atol=tol)), err


if __name__ == "__main__":
    key = jax.random.PRNGKey(0)
    k1, k2 = jax.random.split(key)
    # Shallow-channel path (kx-folded deep contraction), spec-sized shapes.
    _run_case(k1, b=2, c_in=4, c_out=4, k=3, h=16, w=16)
    # Deep-channel path (per-tap dots) with forced multi-H-tile grid: exercises the
    # hoisted per-batch weight scratch being reused across ti and refreshed across bi.
    _run_case(k2, b=2, c_in=256, c_out=128, k=3, h=16, w=16, tile_rows=64)
    print("KERNEL_OK")
</pallas_src>

<mosaic_0001>
module attributes {stable_mosaic.version = 11 : i64} {
  func.func @_modconv_kernel(%arg0: i32, %arg1: i32, %arg2: memref<1x12x1xf32, #tpu.memory_space<vmem>>, %arg3: memref<3x12x128xf32, #tpu.memory_space<vmem>>, %arg4: memref<1x18x16x12xbf16, #tpu.memory_space<vmem>>, %arg5: memref<1x256x128xf32, #tpu.memory_space<vmem>>, %arg6: memref<3x12x128xbf16, #tpu.memory_space<vmem>>) attributes {dimension_semantics = [#tpu.dimension_semantics<parallel>, #tpu.dimension_semantics<arbitrary>], iteration_bounds = array<i64: 2, 1>, scalar_prefetch = 0 : i64, scratch_operands = 1 : i64, tpu.core_type = #tpu.core_type<tc>, window_params = [{transform_indices = @transform_0, window_bounds = array<i64: 1, 12, 1>}, {pipeline_mode = #tpu.pipeline_mode<synchronous>, transform_indices = @transform_1, window_bounds = array<i64: 3, 12, 128>}, {transform_indices = @transform_2, window_bounds = array<i64: 1, 18, 16, 12>}, {transform_indices = @transform_3, window_bounds = array<i64: 1, 256, 128>}]} {
    %c0_i32 = arith.constant 0 : i32
    %0 = arith.cmpi eq, %arg1, %c0_i32 : i32
    %1 = arith.extui %0 : i1 to i32
    %c0_i32_0 = arith.constant 0 : i32
    %2 = arith.cmpi ne, %1, %c0_i32_0 : i32
    scf.if %2 {
      %c0_23 = arith.constant 0 : index
      %c0_24 = arith.constant 0 : index
      %c0_25 = arith.constant 0 : index
      %36 = vector.load %arg3[%c0_23, %c0_24, %c0_25] : memref<3x12x128xf32, #tpu.memory_space<vmem>>, vector<3x12x128xf32>
      %c0_26 = arith.constant 0 : index
      %c0_27 = arith.constant 0 : index
      %c0_28 = arith.constant 0 : index
      %37 = vector.load %arg2[%c0_26, %c0_27, %c0_28] : memref<1x12x1xf32, #tpu.memory_space<vmem>>, vector<1x12x1xf32>
      %38 = vector.broadcast %37 : vector<1x12x1xf32> to vector<3x12x128xf32>
      %39 = arith.mulf %36, %38 : vector<3x12x128xf32>
      %40 = arith.mulf %39, %39 : vector<3x12x128xf32>
      %cst_29 = arith.constant dense<0.000000e+00> : vector<3x128xf32>
      %41 = vector.multi_reduction <add>, %40, %cst_29 [1] : vector<3x12x128xf32> to vector<3x128xf32>
      %42 = vector.shape_cast %41 : vector<3x128xf32> to vector<3x1x128xf32>
      %cst_30 = arith.constant dense<0.000000e+00> : vector<1x128xf32>
      %43 = vector.multi_reduction <add>, %42, %cst_30 [0] : vector<3x1x128xf32> to vector<1x128xf32>
      %44 = vector.shape_cast %43 : vector<1x128xf32> to vector<1x1x128xf32>
      %cst_31 = arith.constant 9.99999993E-9 : f32
      %45 = vector.broadcast %cst_31 : f32 to vector<1x1x128xf32>
      %46 = arith.addf %44, %45 : vector<1x1x128xf32>
      %47 = math.rsqrt %46 : vector<1x1x128xf32>
      %48 = vector.broadcast %47 : vector<1x1x128xf32> to vector<3x12x128xf32>
      %49 = arith.mulf %39, %48 : vector<3x12x128xf32>
      %50 = arith.truncf %49 : vector<3x12x128xf32> to vector<3x12x128xbf16>
      %c0_32 = arith.constant 0 : index
      %c0_33 = arith.constant 0 : index
      %c0_34 = arith.constant 0 : index
      %51 = vector.load %arg6[%c0_32, %c0_33, %c0_34] : memref<3x12x128xbf16, #tpu.memory_space<vmem>>, vector<3x12x128xbf16>
      tpu.vector_store %arg6[%c0_32, %c0_33, %c0_34], %50 {strides = array<i32>} : memref<3x12x128xbf16, #tpu.memory_space<vmem>>, vector<3x12x128xbf16>,
    } else {
    }
    %c16_i32 = arith.constant 16 : i32
    %3 = arith.muli %arg1, %c16_i32 : i32
    %4 = tpu.assume_multiple %3, 16 : i32
    %cst = arith.constant 0.000000e+00 : f32
    %5 = vector.broadcast %cst : f32 to vector<256x128xf32>
    %c0_i32_1 = arith.constant 0 : i32
    %6 = arith.addi %4, %c0_i32_1 : i32
    %c0 = arith.constant 0 : index
    %7 = arith.index_cast %6 : i32 to index
    %c0_2 = arith.constant 0 : index
    %c0_3 = arith.constant 0 : index
    %8 = vector.load %arg4[%c0, %7, %c0_2, %c0_3] : memref<1x18x16x12xbf16, #tpu.memory_space<vmem>>, vector<1x16x16x12xbf16>
    %9 = vector.shape_cast %8 : vector<1x16x16x12xbf16> to vector<16x16x12xbf16>
    %10 = vector.shape_cast %9 : vector<16x16x12xbf16> to vector<256x12xbf16>
    %c0_4 = arith.constant 0 : index
    %c0_5 = arith.constant 0 : index
    %c0_6 = arith.constant 0 : index
    %11 = vector.load %arg6[%c0_4, %c0_5, %c0_6] : memref<3x12x128xbf16, #tpu.memory_space<vmem>>, vector<1x12x128xbf16>
    %12 = vector.shape_cast %11 : vector<1x12x128xbf16> to vector<12x128xbf16>
    %cst_7 = arith.constant dense<0.000000e+00> : vector<256x128xf32>
    %13 = tpu.matmul %10, %12, %cst_7 {dimension_numbers = #tpu.dot_dimension_numbers<[1], [0], [0], [1], [0, 0, 1, 1], [], []>} : vector<256x12xbf16>, vector<12x128xbf16>, vector<256x128xf32> -> vector<256x128xf32>
    %14 = arith.addf %5, %13 : vector<256x128xf32>
    %c1_i32 = arith.constant 1 : i32
    %15 = arith.addi %4, %c1_i32 : i32
    %c0_8 = arith.constant 0 : index
    %16 = arith.index_cast %15 : i32 to index
    %c0_9 = arith.constant 0 : index
    %c0_10 = arith.constant 0 : index
    %17 = vector.load %arg4[%c0_8, %16, %c0_9, %c0_10] : memref<1x18x16x12xbf16, #tpu.memory_space<vmem>>, vector<1x16x16x12xbf16>
    %18 = vector.shape_cast %17 : vector<1x16x16x12xbf16> to vector<16x16x12xbf16>
    %19 = vector.shape_cast %18 : vector<16x16x12xbf16> to vector<256x12xbf16>
    %c1 = arith.constant 1 : index
    %c0_11 = arith.constant 0 : index
    %c0_12 = arith.constant 0 : index
    %20 = vector.load %arg6[%c1, %c0_11, %c0_12] : memref<3x12x128xbf16, #tpu.memory_space<vmem>>, vector<1x12x128xbf16>
    %21 = vector.shape_cast %20 : vector<1x12x128xbf16> to vector<12x128xbf16>
    %cst_13 = arith.constant dense<0.000000e+00> : vector<256x128xf32>
    %22 = tpu.matmul %19, %21, %cst_13 {dimension_numbers = #tpu.dot_dimension_numbers<[1], [0], [0], [1], [0, 0, 1, 1], [], []>} : vector<256x12xbf16>, vector<12x128xbf16>, vector<256x128xf32> -> vector<256x128xf32>
    %23 = arith.addf %14, %22 : vector<256x128xf32>
    %c2_i32 = arith.constant 2 : i32
    %24 = arith.addi %4, %c2_i32 : i32
    %c0_14 = arith.constant 0 : index
    %25 = arith.index_cast %24 : i32 to index
    %c0_15 = arith.constant 0 : index
    %c0_16 = arith.constant 0 : index
    %26 = vector.load %arg4[%c0_14, %25, %c0_15, %c0_16] : memref<1x18x16x12xbf16, #tpu.memory_space<vmem>>, vector<1x16x16x12xbf16>
    %27 = vector.shape_cast %26 : vector<1x16x16x12xbf16> to vector<16x16x12xbf16>
    %28 = vector.shape_cast %27 : vector<16x16x12xbf16> to vector<256x12xbf16>
    %c2 = arith.constant 2 : index
    %c0_17 = arith.constant 0 : index
    %c0_18 = arith.constant 0 : index
    %29 = vector.load %arg6[%c2, %c0_17, %c0_18] : memref<3x12x128xbf16, #tpu.memory_space<vmem>>, vector<1x12x128xbf16>
    %30 = vector.shape_cast %29 : vector<1x12x128xbf16> to vector<12x128xbf16>
    %cst_19 = arith.constant dense<0.000000e+00> : vector<256x128xf32>
    %31 = tpu.matmul %28, %30, %cst_19 {dimension_numbers = #tpu.dot_dimension_numbers<[1], [0], [0], [1], [0, 0, 1, 1], [], []>} : vector<256x12xbf16>, vector<12x128xbf16>, vector<256x128xf32> -> vector<256x128xf32>
    %32 = arith.addf %23, %31 : vector<256x128xf32>
    %c0_20 = arith.constant 0 : index
    %c0_21 = arith.constant 0 : index
    %c0_22 = arith.constant 0 : index
    %33 = vector.load %arg5[%c0_20, %c0_21, %c0_22] : memref<1x256x128xf32, #tpu.memory_space<vmem>>, vector<1x256x128xf32>
    %34 = vector.shape_cast %33 : vector<1x256x128xf32> to vector<256x128xf32>
    %35 = vector.shape_cast %32 : vector<256x128xf32> to vector<1x256x128xf32>
    tpu.vector_store %arg5[%c0_20, %c0_21, %c0_22], %35 {strides = array<i32>} : memref<1x256x128xf32, #tpu.memory_space<vmem>>, vector<1x256x128xf32>,
    return
  }
  func.func @transform_0(%arg0: i32, %arg1: i32) -> (i32, i32, i32) {
    %c0_i32 = arith.constant 0 : i32
    %c0_i32_0 = arith.constant 0 : i32
    %c0_i32_1 = arith.constant 0 : i32
    return %arg0, %c0_i32, %c0_i32_0 : i32, i32, i32
  }
  func.func @transform_1(%arg0: i32, %arg1: i32) -> (i32, i32, i32) {
    %c0_i32 = arith.constant 0 : i32
    %c0_i32_0 = arith.constant 0 : i32
    %c0_i32_1 = arith.constant 0 : i32
    %c0_i32_2 = arith.constant 0 : i32
    return %c0_i32, %c0_i32_0, %c0_i32_1 : i32, i32, i32
  }
  func.func @transform_2(%arg0: i32, %arg1: i32) -> (i32, i32, i32, i32) {
    %c0_i32 = arith.constant 0 : i32
    %c0_i32_0 = arith.constant 0 : i32
    %c0_i32_1 = arith.constant 0 : i32
    %c0_i32_2 = arith.constant 0 : i32
    return %arg0, %c0_i32, %c0_i32_0, %c0_i32_1 : i32, i32, i32, i32
  }
  func.func @transform_3(%arg0: i32, %arg1: i32) -> (i32, i32, i32) {
    %c0_i32 = arith.constant 0 : i32
    %c0_i32_0 = arith.constant 0 : i32
    return %arg0, %arg1, %c0_i32 : i32, i32, i32
  }
}

</mosaic_0001>

<bundles_post_ra>
// kernel: tpu_custom_call.1
= control target key start
LH: loop header
LB: loop body
LE: loop exit
PB: predicated region body
PF: predicated region fallthrough
CT: control target
= control target key end

     0   :  { %8 = vsyncpa [#allocation4], 0  ;;  %s2399_s0 = inlined_call_operand.vmem [shape: f32[2,12,1], index: 0, kind: input, shape index: {}]   ;;  %s2400_s1 = inlined_call_operand.vmem [shape: f32[3,12,128], index: 1, kind: input, shape index: {}]   ;;  %s2401_s2 = inlined_call_operand.vmem [shape: bf16[2,18,16,12], index: 2, kind: input, shape index: {}]   ;;  %s2402_s3 = inlined_call_operand.hbm [shape: f32[2,256,128], index: 3, kind: output, shape index: {}]  }
   0x1   :  { %10 = vsyncpa [#allocation4 + $0x1], 0  ;;  %s2119_s12 = smov 0   ;;  %s2121_s13 = smov 0  }
   0x2   :  { %s2123_s14 = smov 0   ;;  %s2125_s15 = smov 0  }
   0x3   :  { %s2127_s16 = smov 0   ;;  %s2129_s17 = smov 0  }
   0x4 LB: > { %s1488_s18 = sadd.s32 4294967295, %s2093_s17   ;;  %s1489_s19 = sadd.s32 4294967294, %s2093_s17   ;;  %s2093_s17 = sphi %s2129_s17, %s16_s17   ;;  %s2089_s16 = sphi %s2127_s16, %s2409_s16   ;;  %s2085_s15 = sphi %s2125_s15, %s2408_s15   ;;  %s2081_s14 = sphi %s2123_s14, %s2407_s14   ;;  %s2077_s13 = sphi %s2121_s13, %s2406_s13   ;;  %s2073_s12 = sphi %s2119_s12, %s2405_s12  }
   0x5   : > { %s28_s20 = sadd.s32 1, %s2089_s16  ;;  %s110_s21 = sadd.s32 1, %s2081_s14 }
   0x6   : > { %p30_p0 = scmp.ge.s32.totalorder %s28_s20, 2  ;;  %p120_p1 = scmp.ne.s32.totalorder %s2081_s14, %s2077_s13 }
   0x7   : > { %p121_p2 = scmp.eq.s32.totalorder %s1488_s18, 1  ;;  %p126_p3 = scmp.ne.s32.totalorder %s2077_s13, %s2073_s12 }
   0x8   : > { %s2411_s20 = smov (%p30_p0, %s28_s20), 0  ;;  %p127_p5 = scmp.eq.s32.totalorder %s1489_s19, 1 }
   0x9   : > { %p2159_p4 = por %p121_p2, %p120_p1  ;;  %s105_s23 = ssub.s32 %s2089_s16, %s2411_s20 }
   0xa   : > { %p1492_p6 = scmp.ge.s32.totalorder %s2093_s17, 1  ;;  %p108_p7 = scmp.eq.s32.totalorder %s105_s23, 0 }
   0xb   : > { %p2166_p8 = por %p127_p5, %p126_p3  ;;  %p164_p9 = scmp.lt.s32.totalorder %s2093_s17, 3 }
   0xc   : > { %s2172_s25 = scalar_select %p108_p7, %s2081_s14, %s110_s21  }
   0xd   : > { %p165_p10 = pnand %p1492_p6, %p164_p9 }
   0xe   : > { %p193_p11 = scmp.lt.s32.totalorder (!%p165_p10), %s2085_s15, 1  ;;  %v2095_v0 = vmov (!%p165_p10), 0   ;;  %vm466_vm0 = vcmask (!%p165_p10), 97280   ;;  %v210_v5 = vld [vmem:[%s2400_s1 + $0x8] sm:$0xf] (!%p165_p10)  ;;  %v209_v12 = vld [vmem:[%s2400_s1] sm:$0xff] (!%p165_p10) }
   0xf   : > { %168 = sbr.rel (%p165_p10) target bundleno = 532 (0x214), region = 32  ;;  %1961 = vset.pattern.permute.xlu0 (!%p165_p10), %v2095_v0  ;;  %v212_v6 = vld [vmem:[%s2400_s1 + $0x18] sm:$0xf] (!%p165_p10)  ;;  %v214_v7 = vld [vmem:[%s2400_s1 + $0x28] sm:$0xf] (!%p165_p10)  ;;  %v211_v13 = vld [vmem:[%s2400_s1 + $0x10] sm:$0xff] (!%p165_p10) }
  0x10   : > { %v213_v14 = vld [vmem:[%s2400_s1 + $0x20] sm:$0xff] (!%p165_p10)  ;;  %vm239_vm1 = vcmask (!%p165_p10), 1043456   ;;  %vm515_vm2 = vcmask (!%p165_p10), 1045504   ;;  %s190_s30 = sand.u32 (!%p165_p10), 1, %s2077_s13   ;;  %s1678_s6 = sshll.u32 (!%p165_p10), %s2085_s15, 12 }
  0x11   : > { %s2344_s10 = scalar_lea.hbm (!%p165_p10), %s2402_s3, %s1678_s6  ;;  %s2096_s18 = smov (!%p165_p10), [#allocation3]  }
  0x12   : > { %s2019_s19 = sshll.u32 (!%p165_p10), %s2096_s18, 4  ;;  %s2020_s19 = int_to_ptr.vmem [resolvable:$false] %s2019_s19 }
  0x13   : > { %s2021_s21 = scalar_lea.vmem (!%p165_p10), %s2020_s19, 8192 }
  0x16   : > { %s194_s26 = scalar_select %p193_p11, %s2085_s15, 1 }
  0x17   : > { %s2353_s15 = scalar_lea.sflag [#allocation4], %s190_s30 }
  0x18   : > { %s1671_s27 = sshll.u32 %s194_s26, 4  ;;  %s1902_s28 = smul.u32 144, %s194_s26 }
  0x19   : > { %s197_s4 = scalar_lea.vmem %s2399_s0, %s1671_s27 }
  0x1a   : > { %s2182_s7 = scalar_lea.vmem %s2401_s2, %s1902_s28  ;;  %v216_v1 = vld [vmem:[%s197_s4 + $0x8] sm:$0xf]  ;;  %v215_v2 = vld [vmem:[%s197_s4] sm:$0xff]  ;;  %s1493_s4 = sshll.u32 %s190_s30, 8 }
  0x1b   : > { %224 = vperm.xlu0 %1961, %v216_v1   ;;  %v1965_v3 = vld [vmem:[%s2182_s7 + $0x8] sm:$0xff]   ;;  %v1966_v4 = vld [vmem:[%s2182_s7] sm:$0xff]   ;;  %s2308_s5 = scalar_lea.vmem [#allocation3], %s1493_s4 }
  0x1c   : > { %1732 = vmatprep.mubr.msk.bf16.mxu1 %vm466_vm0, %v1965_v3  ;;  %1766 = vmatprep.mubr.msk.bf16.mxu0 %vm466_vm0, %v1966_v4  ;;  %v1967_v4 = vld [vmem:[%s2182_s7 + $0x10] sm:$0xff]  }
  0x1f   : > { %219 = vperm.xlu0 %1961, %v215_v2  }
  0x9a   : > { %v225_v8 = vpop.permute.xlu0 %224 }
  0x9b   : > { %v228_v9 = vmul.f32 %v225_v8, %v210_v5  ;;  %v230_v10 = vmul.f32 %v225_v8, %v212_v6  ;;  %v232_v11 = vmul.f32 %v225_v8, %v214_v7  ;;  %v1968_v7 = vld [vmem:[%s2182_s7 + $0x8] sm:$0xff]   ;;  %v1969_v8 = vld [vmem:[%s2182_s7 + $0x18] sm:$0xff]  }
  0x9d   : > { %v234_v15 = vmul.f32 %v228_v9, %v228_v9  ;;  %v236_v17 = vmul.f32 %v230_v10, %v230_v10  ;;  %v238_v18 = vmul.f32 %v232_v11, %v232_v11 }
  0x9e   : > { %v220_v16 = vpop.permute.xlu0 %219 }
  0x9f   : > { %v227_v19 = vmul.f32 %v220_v16, %v209_v12  ;;  %v229_v20 = vmul.f32 %v220_v16, %v211_v13  ;;  %v231_v21 = vmul.f32 %v220_v16, %v213_v14  ;;  %v240_v23 = vsel %vm239_vm1, %v234_v15, 0.0  ;;  %v1972_v12 = vld [vmem:[%s2182_s7 + $0x18] sm:$0xff]   ;;  %v1973_v13 = vld [vmem:[%s2182_s7 + $0x28] sm:$0xff]   ;;  %v1974_v14 = vld [vmem:[%s2182_s7 + $0x20] sm:$0xff]  }
  0xa0   : > { %v248_v26 = vsel %vm239_vm1, %v236_v17, 0.0  ;;  %v256_v27 = vsel %vm239_vm1, %v238_v18, 0.0  ;;  %v1975_v15 = vld [vmem:[%s2182_s7 + $0x30] sm:$0xff]   ;;  %v1976_v16 = vld [vmem:[%s2182_s7 + $0x28] sm:$0xff]   ;;  %v1977_v17 = vld [vmem:[%s2182_s7 + $0x38] sm:$0xff]  }
  0xa1   : > { %v233_v22 = vmul.f32 %v227_v19, %v227_v19  ;;  %v235_v24 = vmul.f32 %v229_v20, %v229_v20  ;;  %v237_v25 = vmul.f32 %v231_v21, %v231_v21  ;;  %v1978_v18 = vld [vmem:[%s2182_s7 + $0x30] sm:$0xff]  }
  0xa3   : > { %v241_v28 = vadd.f32 %v240_v23, %v233_v22  ;;  %v249_v29 = vadd.f32 %v248_v26, %v235_v24  ;;  %v257_v30 = vadd.f32 %v256_v27, %v237_v25  ;;  %v1982_v22 = vld [vmem:[%s2182_s7 + $0x10] sm:$0xff]   ;;  %v1984_v24 = vld [vmem:[%s2182_s7 + $0x18] sm:$0xff]   ;;  %v1986_v26 = vld [vmem:[%s2182_s7 + $0x20] sm:$0xff]  }
  0xa4   : > { %v1983_v23 = vld [vmem:[%s2182_s7 + $0x50] sm:$0xff]   ;;  %v1985_v25 = vld [vmem:[%s2182_s7 + $0x58] sm:$0xff]   ;;  %v1987_v27 = vld [vmem:[%s2182_s7 + $0x60] sm:$0xff]  }
  0xa5   : > { %v242_v31 = vrot.slane %v241_v28, 4  ;;  %v250_v32 = vrot.slane %v249_v29, 4  ;;  %v258_v33 = vrot.slane %v257_v30, 4 }
  0xa7   : > { %v243_v34 = vadd.f32 %v242_v31, %v241_v28  ;;  %v251_v35 = vadd.f32 %v250_v32, %v249_v29  ;;  %v259_v36 = vadd.f32 %v258_v33, %v257_v30  ;;  %v1988_v28 = vld [vmem:[%s2182_s7 + $0x28] sm:$0xff]   ;;  %v1990_v30 = vld [vmem:[%s2182_s7 + $0x30] sm:$0xff]   ;;  %v1992_v32 = vld [vmem:[%s2182_s7 + $0x38] sm:$0xff]  }
  0xa8   : > { %v1989_v29 = vld [vmem:[%s2182_s7 + $0x68] sm:$0xff]   ;;  %v1991_v31 = vld [vmem:[%s2182_s7 + $0x70] sm:$0xff]   ;;  %v1993_v33 = vld [vmem:[%s2182_s7 + $0x78] sm:$0xff]  }
  0xa9   : > { %v244_v37 = vrot.slane %v243_v34, 2  ;;  %v252_v38 = vrot.slane %v251_v35, 2  ;;  %v260_v39 = vrot.slane %v259_v36, 2 }
  0xab   : > { %v245_v40 = vadd.f32 %v244_v37, %v243_v34  ;;  %v253_v41 = vadd.f32 %v252_v38, %v251_v35  ;;  %v261_v42 = vadd.f32 %v260_v39, %v259_v36  ;;  %v1994_v34 = vld [vmem:[%s2182_s7 + $0x40] sm:$0xff]   ;;  %v1996_v36 = vld [vmem:[%s2182_s7 + $0x48] sm:$0xff]   ;;  %v1998_v38 = vld [vmem:[%s2182_s7 + $0x50] sm:$0xff]  }
  0xac   : > { %v1995_v35 = vld [vmem:[%s2182_s7 + $0x80] sm:$0xff]   ;;  %v1999_v39 = vld [vmem:[%s2182_s7 + $0x48] sm:$0xff]  }
  0xad   : > { %v246_v43 = vrot.slane %v245_v40, 1  ;;  %v254_v44 = vrot.slane %v253_v41, 1  ;;  %v262_v45 = vrot.slane %v261_v42, 1  ;;  %v1997_v37 = vld [vmem:[%s2182_s7 + $0x40] sm:$0xff]  }
  0xaf   : > { %v247_v46 = vadd.f32 %v246_v43, %v245_v40  ;;  %v255_v47 = vadd.f32 %v254_v44, %v253_v41  ;;  %v263_v48 = vadd.f32 %v262_v45, %v261_v42  ;;  %v2000_v40 = vld [vmem:[%s2182_s7 + $0x58] sm:$0xff]   ;;  %v2001_v41 = vld [vmem:[%s2182_s7 + $0x50] sm:$0xff]   ;;  %v2002_v42 = vld [vmem:[%s2182_s7 + $0x60] sm:$0xff]  }
  0xb0   : > { %v2003_v43 = vld [vmem:[%s2182_s7 + $0x58] sm:$0xff]   ;;  %v2004_v44 = vld [vmem:[%s2182_s7 + $0x68] sm:$0xff]   ;;  %v2005_v45 = vld [vmem:[%s2182_s7 + $0x60] sm:$0xff]  }
  0xb1   : > { %v264_v49 = vadd.f32 %v255_v47, %v247_v46  ;;  %v2006_v46 = vld [vmem:[%s2182_s7 + $0x70] sm:$0xff]   ;;  %v2007_v47 = vld [vmem:[%s2182_s7 + $0x68] sm:$0xff]  }
  0xb3   : > { %v265_v50 = vadd.f32 %v264_v49, %v263_v48  ;;  %v2008_v48 = vld [vmem:[%s2182_s7 + $0x78] sm:$0xff]   ;;  %v2009_v49 = vld [vmem:[%s2182_s7 + $0x70] sm:$0xff]  }
  0xb5   : > { %v266_v51 = vadd.f32 1e-08, %v265_v50  ;;  %v2010_v50 = vld [vmem:[%s2182_s7 + $0x80] sm:$0xff]  }
  0xb7   : > { %2013 = vrsqrt.f32 %v266_v51  ;;  %v2011_v51 = vld [vmem:[%s2182_s7 + $0x78] sm:$0xff]  }
  0xc1   : > { %v2014_v52 = vpop.eup %2013 }
  0xc2   : > { %v268_v53 = vmul.f32 %v2014_v52, %v227_v19  ;;  %v270_v54 = vmul.f32 %v2014_v52, %v229_v20  ;;  %v272_v55 = vmul.f32 %v2014_v52, %v231_v21  ;;  %v271_v56 = vmul.f32 %v2014_v52, %v230_v10  ;;  %v1979_v19 = vld [vmem:[%s2182_s7 + $0x40] sm:$0xff]   ;;  %v1980_v20 = vld [vmem:[%s2182_s7 + $0x38] sm:$0xff]   ;;  %v1981_v21 = vld [vmem:[%s2182_s7 + $0x48] sm:$0xff]  }
  0xc3   : > { %v269_v57 = vmul.f32 %v2014_v52, %v228_v9  ;;  %v273_v58 = vmul.f32 %v2014_v52, %v232_v11  ;;  %v1970_v9 = vld [vmem:[%s2182_s7 + $0x10] sm:$0xff]   ;;  %v1971_v11 = vld [vmem:[%s2182_s7 + $0x20] sm:$0xff]   ;;  %v2012_v52 = vld [vmem:[%s2182_s7 + $0x88] sm:$0xff]   ;;  %s1393_s7 = sshll.u32 %s2308_s5, 4  ;;  %s2346_s7 = int_to_ptr.vmem [resolvable:$true] %s1393_s7 }
  0xc4   : > { %v1672_v59 = vpack.c.bf16 %v268_v53, %v268_v53  ;;  %v1674_v60 = vpack.c.bf16 %v270_v54, %v270_v54  ;;  %v1676_v61 = vpack.c.bf16 %v272_v55, %v272_v55  ;;  %v1675_v62 = vpack.c.bf16 %v271_v56, %v271_v56  ;;  %s2015_s11 = scalar_lea.vmem %s2346_s7, 4096  ;;  %p2022_p1 = scmp.lt.s32.totalorder %s2346_s7, %s2020_s19 }
  0xc5   : > { %v1673_v63 = vpack.c.bf16 %v269_v57, %v269_v57  ;;  %v1677_v0 = vpack.c.bf16 %v273_v58, %v273_v58  ;;  %p2016_p12 = scmp.ne.s32.totalorder %s2346_s7, %s2015_s11  ;;  %p2023_p2 = scmp.lt.s32.totalorder %s2021_s21, %s2015_s11 }
  0xc6   : > { %298 = vst [vmem:[#allocation2] sm:$0xf] %v1672_v59  ;;  %300 = vst [vmem:[#allocation2 + $0x8] sm:$0xf] %v1674_v60 }
  0xc7   : > { %302 = vst [vmem:[#allocation2 + $0x10] sm:$0xf] %v1676_v61  ;;  %301 = vst [vmem:[#allocation2 + $0xc] sm:$0x3] %v1675_v62  ;;  %p2017_p13 = pnand %p2016_p12, %p2159_p4  ;;  %p2024_p3 = por %p2023_p2, %p2022_p1 }
  0xc8   : > { %299 = vst [vmem:[#allocation2 + $0x4] sm:$0x3] %v1673_v63  ;;  %303 = vst [vmem:[#allocation2 + $0x14] sm:$0x3] %v1677_v0 }
  0xc9   : > { %p2018_p0 = pneg %p2017_p13 }
  0xcb   : > { %p2025_p5 = pnand %p2024_p3, %p2018_p0 }
  0xce   : > { %v1962_v1 = vld [vmem:[#allocation2 + $0x8] sm:$0x3f]  }
  0xcf   : > { %v1963_v2 = vld [vmem:[#allocation2] sm:$0x3f]   ;;  %1898 = vmatprep.subr.msk.bf16.mxu1 %vm515_vm2, %v1962_v1  ;;  %v517_v3 = vsel %vm515_vm2, %v1962_v1, 0  ;;  %v1964_v6 = vld [vmem:[#allocation2 + $0x10] sm:$0x3f]  }
  0xd0   : > { %1899 = vmatprep.subr.msk.bf16.mxu0 %vm515_vm2, %v1963_v2  ;;  %1731 = vmatpush3.bf16.msra.mxu1 %v517_v3  ;;  %v814_v5 = vsel %vm515_vm2, %v1963_v2, 0  ;;  %v1150_v10 = vsel %vm515_vm2, %v1964_v6, 0 }
  0xd1   : > { %1765 = vmatpush3.bf16.msra.mxu0 %v814_v5  ;;  %1900 = vmatprep.subr.msk.bf16.mxu1 %vm515_vm2, %v1963_v2 }
  0xd2   : > { %1901 = vmatprep.subr.msk.bf16.mxu0 %vm515_vm2, %v1964_v6 }
  0xd3   : > { %1733 = vmatmul.mubr.msk.bf16.vlgmr.msra.gmra.mrb[0].mxu1 %vm466_vm0, %v1967_v4 }
  0xd4   : > { %1767 = vmatmul.mubr.msk.bf16.vlgmr.msra.gmra.mrb[0].mxu0 %vm466_vm0, %v1968_v7  ;;  %1833 = vmatpush3.bf16.msra.mxu1 %v814_v5 }
  0xd5   : > { %1799 = vmatpush3.bf16.msra.mxu0 %v1150_v10  ;;  %1736 = vmatprep.mubr.msk.bf16.mxu1 %vm466_vm0, %v1969_v8 }
  0xd6   : > { %1770 = vmatprep.mubr.msk.bf16.mxu0 %vm466_vm0, %v1970_v9 }
  0xdb   : > { %1737 = vmatmul.mubr.msk.bf16.gmra.mrb[4].mxu1 %vm466_vm0, %v1971_v11 }
  0xdc   : > { %1771 = vmatmul.mubr.msk.bf16.gmra.mrb[4].mxu0 %vm466_vm0, %v1972_v12  ;;  %1740 = vmatprep.mubr.msk.bf16.mxu1 %vm466_vm0, %v1973_v13 }
  0xdd   : > { %1774 = vmatprep.mubr.msk.bf16.mxu0 %vm466_vm0, %v1974_v14 }
  0xe3   : > { %1741 = vmatmul.mubr.msk.bf16.gmra.mrb[8].mxu1 %vm466_vm0, %v1975_v15 }
  0xe4   : > { %1775 = vmatmul.mubr.msk.bf16.gmra.mrb[8].mxu0 %vm466_vm0, %v1976_v16  ;;  %1744 = vmatprep.mubr.msk.bf16.mxu1 %vm466_vm0, %v1977_v17 }
  0xe5   : > { %1778 = vmatprep.mubr.msk.bf16.mxu0 %vm466_vm0, %v1978_v18 }
  0xeb   : > { %1745 = vmatmul.mubr.msk.bf16.gmra.mrb[12].mxu1 %vm466_vm0, %v1979_v19 }
  0xec   : > { %1779 = vmatmul.mubr.msk.bf16.gmra.mrb[12].mxu0 %vm466_vm0, %v1980_v20  ;;  %1748 = vmatprep.mubr.msk.bf16.mxu1 %vm466_vm0, %v1981_v21 }
  0xed   : > { %1800 = vmatprep.mubr.msk.bf16.mxu0 %vm466_vm0, %v1982_v22 }
  0xf3   : > { %1749 = vmatmul.mubr.msk.bf16.gmra.mrb[16].mxu1 %vm466_vm0, %v1983_v23 }
  0xf4   : > { %1801 = vmatmul.mubr.msk.bf16.vlgmr.msra.gmra.mrb[0].mxu0 %vm466_vm0, %v1984_v24  ;;  %1752 = vmatprep.mubr.msk.bf16.mxu1 %vm466_vm0, %v1985_v25 }
  0xf5   : > { %1804 = vmatprep.mubr.msk.bf16.mxu0 %vm466_vm0, %v1986_v26 }
  0xfb   : > { %1753 = vmatmul.mubr.msk.bf16.gmra.mrb[20].mxu1 %vm466_vm0, %v1987_v27 }
  0xfc   : > { %1805 = vmatmul.mubr.msk.bf16.gmra.mrb[4].mxu0 %vm466_vm0, %v1988_v28  ;;  %1756 = vmatprep.mubr.msk.bf16.mxu1 %vm466_vm0, %v1989_v29 }
  0xfd   : > { %1808 = vmatprep.mubr.msk.bf16.mxu0 %vm466_vm0, %v1990_v30 }
 0x103   : > { %1757 = vmatmul.mubr.msk.bf16.gmra.mrb[24].mxu1 %vm466_vm0, %v1991_v31 }
 0x104   : > { %1809 = vmatmul.mubr.msk.bf16.gmra.mrb[8].mxu0 %vm466_vm0, %v1992_v32  ;;  %1760 = vmatprep.mubr.msk.bf16.mxu1 %vm466_vm0, %v1993_v33 }
 0x105   : > { %1812 = vmatprep.mubr.msk.bf16.mxu0 %vm466_vm0, %v1994_v34 }
 0x10b   : > { %1761 = vmatmul.mubr.msk.bf16.gmra.mrb[28].mxu1 %vm466_vm0, %v1995_v35 }
 0x10c   : > { %1813 = vmatmul.mubr.msk.bf16.gmra.mrb[12].mxu0 %vm466_vm0, %v1996_v36  ;;  %1782 = vmatprep.mubr.msk.bf16.mxu1 %vm466_vm0, %v1997_v37 }
 0x10d   : > { %1816 = vmatprep.mubr.msk.bf16.mxu0 %vm466_vm0, %v1998_v38 }
 0x113   : > { %1783 = vmatmul.mubr.msk.bf16.vlgmr.msra.gmra.mrb[16].mxu1 %vm466_vm0, %v1999_v39 }
 0x114   : > { %1817 = vmatmul.mubr.msk.bf16.gmra.mrb[16].mxu0 %vm466_vm0, %v2000_v40  ;;  %1786 = vmatprep.mubr.msk.bf16.mxu1 %vm466_vm0, %v2001_v41 }
 0x115   : > { %1820 = vmatprep.mubr.msk.bf16.mxu0 %vm466_vm0, %v2002_v42 }
 0x11b   : > { %1787 = vmatmul.mubr.msk.bf16.gmra.mrb[20].mxu1 %vm466_vm0, %v2003_v43 }
 0x11c   : > { %1821 = vmatmul.mubr.msk.bf16.gmra.mrb[20].mxu0 %vm466_vm0, %v2004_v44  ;;  %1790 = vmatprep.mubr.msk.bf16.mxu1 %vm466_vm0, %v2005_v45 }
 0x11d   : > { %1824 = vmatprep.mubr.msk.bf16.mxu0 %vm466_vm0, %v2006_v46 }
 0x123   : > { %1791 = vmatmul.mubr.msk.bf16.gmra.mrb[24].mxu1 %vm466_vm0, %v2007_v47 }
 0x124   : > { %1825 = vmatmul.mubr.msk.bf16.gmra.mrb[24].mxu0 %vm466_vm0, %v2008_v48  ;;  %1794 = vmatprep.mubr.msk.bf16.mxu1 %vm466_vm0, %v2009_v49 }
 0x125   : > { %1828 = vmatprep.mubr.msk.bf16.mxu0 %vm466_vm0, %v2010_v50 }
 0x12b   : > { %1795 = vmatmul.mubr.msk.bf16.gmra.mrb[28].mxu1 %vm466_vm0, %v2011_v51 }
 0x12c   : > { %1829 = vmatmul.mubr.msk.bf16.gmra.mrb[28].mxu0 %vm466_vm0, %v2012_v52 }
 0x1a6   : > { %v1734_v53 = vpop.f32.mrb[0].mxu1 }
 0x1a7   : > { %v553_v54 = vpop.f32.mrb[1].mxu1 }
 0x1a8   : > { %v1735_v55 = vpop.f32.mrb[2].mxu1 }
 0x1a9   : > { %v556_v56 = vpop.f32.mrb[3].mxu1 }
 0x1ae   : > { %v1738_v57 = vpop.f32.mrb[4].mxu1 }
 0x1af   : > { %v569_v58 = vpop.f32.mrb[5].mxu1 }
 0x1b0   : > { %v1739_v59 = vpop.f32.mrb[6].mxu1 }
 0x1b1   : > { %v572_v60 = vpop.f32.mrb[7].mxu1 }
 0x1b6   : > { %v1742_v61 = vpop.f32.mrb[8].mxu1 }
 0x1b7   : > { %v585_v62 = vpop.f32.mrb[9].mxu1 }
 0x1b8   : > { %v1743_v63 = vpop.f32.mrb[10].mxu1 }
 0x1b9   : > { %v588_v0 = vpop.f32.mrb[11].mxu1 }
 0x1be   : > { %v1746_v1 = vpop.f32.mrb[12].mxu1 }
 0x1bf   : > { %v601_v2 = vpop.f32.mrb[13].mxu1 }
 0x1c0   : > { %v1747_v3 = vpop.f32.mrb[14].mxu1 }
 0x1c1   : > { %v604_v4 = vpop.f32.mrb[15].mxu1 }
 0x1c7   : > { %v1802_v5 = vpop.f32.mrb[0].mxu0 }
 0x1c8   : > { %v1834_v6 = vadd.f32 %v1802_v5, %v1734_v53  ;;  %v1186_v7 = vpop.f32.mrb[1].mxu0 }
 0x1c9   : > { %v1835_v8 = vadd.f32 %v1186_v7, %v553_v54  ;;  %v1803_v9 = vpop.f32.mrb[2].mxu0 }
 0x1ca   : > { %1347 = vst [vmem:[%s2308_s5 + $0x10] sm:$0xff] %v1834_v6  ;;  %v1836_v10 = vadd.f32 %v1803_v9, %v1735_v55  ;;  %v1189_v11 = vpop.f32.mrb[3].mxu0 }
 0x1cb   : > { %1345 = vst [vmem:[%s2308_s5] sm:$0xff] %v1835_v8  ;;  %v1837_v12 = vadd.f32 %v1189_v11, %v556_v56 }
 0x1cc   : > { %1348 = vst [vmem:[%s2308_s5 + $0x18] sm:$0xff] %v1836_v10 }
 0x1cd   : > { %1346 = vst [vmem:[%s2308_s5 + $0x8] sm:$0xff] %v1837_v12 }
 0x1cf   : > { %v1806_v13 = vpop.f32.mrb[4].mxu0 }
 0x1d0   : > { %v1838_v14 = vadd.f32 %v1806_v13, %v1738_v57  ;;  %v1202_v15 = vpop.f32.mrb[5].mxu0 }
 0x1d1   : > { %v1839_v16 = vadd.f32 %v1202_v15, %v569_v58  ;;  %v1807_v17 = vpop.f32.mrb[6].mxu0 }
 0x1d2   : > { %1351 = vst [vmem:[%s2308_s5 + $0x30] sm:$0xff] %v1838_v14  ;;  %v1840_v18 = vadd.f32 %v1807_v17, %v1739_v59  ;;  %v1205_v19 = vpop.f32.mrb[7].mxu0 }
 0x1d3   : > { %1349 = vst [vmem:[%s2308_s5 + $0x20] sm:$0xff] %v1839_v16  ;;  %v1841_v20 = vadd.f32 %v1205_v19, %v572_v60 }
 0x1d4   : > { %1352 = vst [vmem:[%s2308_s5 + $0x38] sm:$0xff] %v1840_v18 }
 0x1d5   : > { %1350 = vst [vmem:[%s2308_s5 + $0x28] sm:$0xff] %v1841_v20 }
 0x1d7   : > { %v1810_v21 = vpop.f32.mrb[8].mxu0 }
 0x1d8   : > { %v1842_v22 = vadd.f32 %v1810_v21, %v1742_v61  ;;  %v1218_v23 = vpop.f32.mrb[9].mxu0 }
 0x1d9   : > { %v1843_v24 = vadd.f32 %v1218_v23, %v585_v62  ;;  %v1811_v25 = vpop.f32.mrb[10].mxu0 }
 0x1da   : > { %1355 = vst [vmem:[%s2308_s5 + $0x50] sm:$0xff] %v1842_v22  ;;  %v1844_v26 = vadd.f32 %v1811_v25, %v1743_v63  ;;  %v1221_v27 = vpop.f32.mrb[11].mxu0 }
 0x1db   : > { %1353 = vst [vmem:[%s2308_s5 + $0x40] sm:$0xff] %v1843_v24  ;;  %v1845_v28 = vadd.f32 %v1221_v27, %v588_v0 }
 0x1dc   : > { %1356 = vst [vmem:[%s2308_s5 + $0x58] sm:$0xff] %v1844_v26 }
 0x1dd   : > { %1354 = vst [vmem:[%s2308_s5 + $0x48] sm:$0xff] %v1845_v28 }
 0x1df   : > { %v1814_v29 = vpop.f32.mrb[12].mxu0 }
 0x1e0   : > { %v1846_v30 = vadd.f32 %v1814_v29, %v1746_v1  ;;  %v1234_v31 = vpop.f32.mrb[13].mxu0 }
 0x1e1   : > { %v1847_v32 = vadd.f32 %v1234_v31, %v601_v2  ;;  %v1815_v33 = vpop.f32.mrb[14].mxu0 }
 0x1e2   : > { %1359 = vst [vmem:[%s2308_s5 + $0x70] sm:$0xff] %v1846_v30  ;;  %v1848_v34 = vadd.f32 %v1815_v33, %v1747_v3  ;;  %v1237_v35 = vpop.f32.mrb[15].mxu0 }
 0x1e3   : > { %1357 = vst [vmem:[%s2308_s5 + $0x60] sm:$0xff] %v1847_v32  ;;  %v1849_v36 = vadd.f32 %v1237_v35, %v604_v4 }
 0x1e4   : > { %1360 = vst [vmem:[%s2308_s5 + $0x78] sm:$0xff] %v1848_v34 }
 0x1e5   : > { %1358 = vst [vmem:[%s2308_s5 + $0x68] sm:$0xff] %v1849_v36 }
 0x1e6   : > { %v1784_v37 = vpop.f32.mrb[16].mxu1 }
 0x1e7   : > { %v1818_v38 = vpop.f32.mrb[16].mxu0  ;;  %v914_v39 = vpop.f32.mrb[17].mxu1 }
 0x1e8   : > { %v1850_v40 = vadd.f32 %v1818_v38, %v1784_v37  ;;  %v1250_v41 = vpop.f32.mrb[17].mxu0  ;;  %v1785_v42 = vpop.f32.mrb[18].mxu1 }
 0x1e9   : > { %v1851_v43 = vadd.f32 %v1250_v41, %v914_v39  ;;  %v1819_v44 = vpop.f32.mrb[18].mxu0  ;;  %v917_v45 = vpop.f32.mrb[19].mxu1 }
 0x1ea   : > { %1363 = vst [vmem:[%s2308_s5 + $0x90] sm:$0xff] %v1850_v40  ;;  %v1852_v46 = vadd.f32 %v1819_v44, %v1785_v42  ;;  %v1253_v47 = vpop.f32.mrb[19].mxu0 }
 0x1eb   : > { %1361 = vst [vmem:[%s2308_s5 + $0x80] sm:$0xff] %v1851_v43  ;;  %v1853_v48 = vadd.f32 %v1253_v47, %v917_v45 }
 0x1ec   : > { %1364 = vst [vmem:[%s2308_s5 + $0x98] sm:$0xff] %v1852_v46 }
 0x1ed   : > { %1362 = vst [vmem:[%s2308_s5 + $0x88] sm:$0xff] %v1853_v48 }
 0x1ee   : > { %v1788_v49 = vpop.f32.mrb[20].mxu1 }
 0x1ef   : > { %v1822_v50 = vpop.f32.mrb[20].mxu0  ;;  %v930_v51 = vpop.f32.mrb[21].mxu1 }
 0x1f0   : > { %v1854_v52 = vadd.f32 %v1822_v50, %v1788_v49  ;;  %v1266_v53 = vpop.f32.mrb[21].mxu0  ;;  %v1789_v54 = vpop.f32.mrb[22].mxu1 }
 0x1f1   : > { %v1855_v55 = vadd.f32 %v1266_v53, %v930_v51  ;;  %v1823_v56 = vpop.f32.mrb[22].mxu0  ;;  %v933_v57 = vpop.f32.mrb[23].mxu1 }
 0x1f2   : > { %1367 = vst [vmem:[%s2308_s5 + $0xb0] sm:$0xff] %v1854_v52  ;;  %v1856_v58 = vadd.f32 %v1823_v56, %v1789_v54  ;;  %v1269_v59 = vpop.f32.mrb[23].mxu0 }
 0x1f3   : > { %1365 = vst [vmem:[%s2308_s5 + $0xa0] sm:$0xff] %v1855_v55  ;;  %v1857_v60 = vadd.f32 %v1269_v59, %v933_v57 }
 0x1f4   : > { %1368 = vst [vmem:[%s2308_s5 + $0xb8] sm:$0xff] %v1856_v58 }
 0x1f5   : > { %1366 = vst [vmem:[%s2308_s5 + $0xa8] sm:$0xff] %v1857_v60 }
 0x1f6   : > { %v1792_v61 = vpop.f32.mrb[24].mxu1 }
 0x1f7   : > { %v1826_v62 = vpop.f32.mrb[24].mxu0  ;;  %v946_v63 = vpop.f32.mrb[25].mxu1 }
 0x1f8   : > { %v1858_v0 = vadd.f32 %v1826_v62, %v1792_v61  ;;  %v1282_v1 = vpop.f32.mrb[25].mxu0  ;;  %v1793_v2 = vpop.f32.mrb[26].mxu1 }
 0x1f9   : > { %v1859_v3 = vadd.f32 %v1282_v1, %v946_v63  ;;  %v1827_v4 = vpop.f32.mrb[26].mxu0  ;;  %v949_v5 = vpop.f32.mrb[27].mxu1 }
 0x1fa   : > { %1371 = vst [vmem:[%s2308_s5 + $0xd0] sm:$0xff] %v1858_v0  ;;  %v1860_v6 = vadd.f32 %v1827_v4, %v1793_v2  ;;  %v1285_v7 = vpop.f32.mrb[27].mxu0 }
 0x1fb   : > { %1369 = vst [vmem:[%s2308_s5 + $0xc0] sm:$0xff] %v1859_v3  ;;  %v1861_v8 = vadd.f32 %v1285_v7, %v949_v5 }
 0x1fc   : > { %1372 = vst [vmem:[%s2308_s5 + $0xd8] sm:$0xff] %v1860_v6 }
 0x1fd   : > { %1370 = vst [vmem:[%s2308_s5 + $0xc8] sm:$0xff] %v1861_v8 }
 0x1fe   : > { %v1796_v9 = vpop.f32.mrb[28].mxu1 }
 0x1ff   : > { %v1830_v10 = vpop.f32.mrb[28].mxu0  ;;  %v962_v11 = vpop.f32.mrb[29].mxu1 }
 0x200   : > { %v1862_v12 = vadd.f32 %v1830_v10, %v1796_v9  ;;  %v1298_v13 = vpop.f32.mrb[29].mxu0  ;;  %v1797_v14 = vpop.f32.mrb[30].mxu1 }
 0x201   : > { %v1863_v15 = vadd.f32 %v1298_v13, %v962_v11  ;;  %v1831_v16 = vpop.f32.mrb[30].mxu0  ;;  %v965_v17 = vpop.f32.mrb[31].mxu1 }
 0x202   : > { %1375 = vst [vmem:[%s2308_s5 + $0xf0] sm:$0xff] %v1862_v12  ;;  %v1864_v18 = vadd.f32 %v1831_v16, %v1797_v14  ;;  %v1301_v19 = vpop.f32.mrb[31].mxu0 }
 0x203   : > { %1373 = vst [vmem:[%s2308_s5 + $0xe0] sm:$0xff] %v1863_v15  ;;  %v1865_v20 = vadd.f32 %v1301_v19, %v965_v17 }
 0x204   : > { %1376 = vst [vmem:[%s2308_s5 + $0xf8] sm:$0xff] %v1864_v18 }
 0x205   : > { %1374 = vst [vmem:[%s2308_s5 + $0xe8] sm:$0xff] %v1865_v20 }
 0x206   : > { %2028 = shalt.err (!%p2025_p5)
}
 0x207   : > { %s2029_s23 = scalar_lea.hbm %s2344_s10, 4096  ;;  %s2033_s28 = scalar_lea.hbm %s2402_s3, 8192 }
 0x208   : > { %p2030_p6 = scmp.ne.s32.totalorder %s2344_s10, %s2029_s23  ;;  %p2034_p10 = scmp.lt.u32.totalorder %s2344_s10, %s2402_s3 }
 0x209   : > { %p2035_p11 = scmp.lt.u32.totalorder %s2033_s28, %s2029_s23  ;;  %p2037_p13 = scmp.lt.u32.totalorder %s2029_s23, %s2344_s10 }
 0x20a   : > { %p2031_p7 = pnand %p2030_p6, %p2159_p4 }
 0x20b   : > { %p2036_p12 = por %p2035_p11, %p2034_p10 }
 0x20c   : > { %p2032_p9 = pneg %p2031_p7 }
 0x20d   : > { %p2038_p0 = por %p2037_p13, %p2036_p12 }
 0x20f   : > { %p2039_p1 = pnand %p2038_p0, %p2032_p9 }
 0x211   : > { %2042 = shalt.err (!%p2039_p1)
}
 0x212   : > { %s2097_s4 = smov 128   ;;  %s2098_s5 = smov 8  }
 0x213   : > { %1903 = dma.vmem_to_hbm [thread:$0]  (%p2159_p4), %s2346_s7, 4096, %s2344_s10, %s2353_s15, %s2097_s4, %s2097_s4, %s2098_s5  }
 0x214 PF: > { %p1909_p2 = scmp.ge.s32.totalorder %s2093_s17, 2  ;;  %s1408_s6 = sand.u32 1, %s2073_s12  }
 0x215   : > { %s1409_s8 = scalar_lea.sflag [#allocation4], %s1408_s6 }
 0x216   : > { %p1906_p3 = pnand %p1909_p2, %p2166_p8 }
 0x218   : > { %2068 = dma.done.wait (!%p1906_p3), %s1409_s8, 4096  }
 0x219   : > { %2070 = vsyncadd (!%p1906_p3), %s1409_s8, 4294963200  ;;  %s16_s17 = sadd.s32 1, %s2093_s17   ;;  %s2405_s12 = smov %s2077_s13 }
 0x21a   : > { %p13_p5 = scmp.ge.s32.totalorder %s16_s17, 4   ;;  %s2406_s13 = smov %s2081_s14 }
 0x21b   : > { %s2407_s14 = smov %s2172_s25  ;;  %s2408_s15 = smov %s2089_s16 }
 0x21c   : > { %s2409_s16 = smov %s2411_s20  ;;  %15 = sbr.rel (!%p13_p5) target bundleno = 4 (0x4), region = 79 }
 0x223   :  { %1414 = vsyncpa [#allocation4], 1 }
 0x224   :  { %1416 = vsyncpa [#allocation4 + $0x1], 1 }

</bundles_post_ra>
